<compile_context>
chip_gen: v7x
topology: tpu7x:2x2x1
jax: 0.10.0
libtpu: 0.0.40
codegen_flags: <defaults>
</compile_context>

<pallas_src>
import jax
import jax.numpy as jnp
from jax.experimental import pallas as pl
from jax.experimental.pallas import tpu as pltpu


def head_kernel(r_ref, l_ref, w_tm_ref, b_tm_ref, w_cls_ref, b_cls_ref, o_ref):
    # r_ref / l_ref blocks: (Bblk, T, C) for the current batch block.
    Bb, T, C = r_ref.shape
    C2 = 2 * C

    # In-kernel lane concat (2C <= 128 lanes, data already resident in VMEM);
    # the concatenated activation never touches HBM.
    x = jnp.concatenate([r_ref[...], l_ref[...]], axis=-1)        # (Bb, T, 2C)

    # temporal_merging Linear as ONE MXU dot over the flattened (Bb*T) rows.
    # (T is a multiple of 8 here, so the reshape is a pure layout collapse.)
    y = (jnp.dot(x.reshape(Bb * T, C2), w_tm_ref[...],
                 preferred_element_type=jnp.float32)
         + b_tm_ref[...]).reshape(Bb, T, C2)

    # Softmax over the temporal axis (PyTorch Softmax(dim=1)).
    m = jnp.max(y, axis=1, keepdims=True)                         # (Bb, 1, 2C)
    e = jnp.exp(y - m)                                            # (Bb, T, 2C)
    denom = jnp.sum(e, axis=1, keepdims=True)                     # (Bb, 1, 2C)
    s = e * pl.reciprocal(denom, approx=True)                     # EUP vrcp (free slot)

    # Gate with the original features and max-pool over T.
    pooled = jnp.max(s * x, axis=1)                               # (Bb, 2C)

    # Classifier; output width is pre-padded to a multiple of 128 lanes so the
    # store below is an unmasked, lane-dense vst.
    out = (jnp.dot(pooled, w_cls_ref[...], preferred_element_type=jnp.float32)
           + b_cls_ref[...])                                      # (Bb, NCp)
    o_ref[...] = out.astype(o_ref.dtype)


def _round_up(x, m):
    return ((x + m - 1) // m) * m


def head_forward(rhand, lhand, params, *, block_b=None):
    """rhand, lhand: (B, T, C) float32. Returns (B, num_classes)."""
    B, T, C = rhand.shape
    C2 = 2 * C
    NC = params["w_cls"].shape[0]
    NCp = _round_up(NC, 128)                 # lane-dense classifier width

    # --- generation-aware VMEM budget -> batch block size -------------------
    try:
        vmem_cap = int(pltpu.get_tpu_info().vmem_capacity_bytes)
    except Exception:
        vmem_cap = 64 << 20                  # conservative: v7x per-TC VMEM
    act_budget = (32 << 20) if vmem_cap >= (100 << 20) else (16 << 20)

    b8 = _round_up(B, 8)
    if block_b is None:
        per_row_dma = 2 * (2 * T * C + NCp) * 4      # double-buffered in + out
        per_row_tmp = 8 * T * C2 * 4                 # rough live f32 temporaries
        max_rows = max(8, act_budget // max(per_row_dma + per_row_tmp, 1))
        block_b = min(1024, max_rows, b8)
        if b8 >= 16:                                 # keep >= 2 grid steps (v7x: 2 TCs)
            block_b = min(block_b, _round_up((b8 + 1) // 2, 8))
    block_b = max(8, (block_b // 8) * 8)

    # Pad batch up to a multiple of block_b (zero rows give bias-only logits
    # with a zero gate; they are sliced off below).
    Bp = _round_up(B, block_b)
    if Bp != B:
        pad = Bp - B
        rhand = jnp.pad(rhand, ((0, pad), (0, 0), (0, 0)))
        lhand = jnp.pad(lhand, ((0, pad), (0, 0), (0, 0)))

    # --- merged / lane-padded weights (tiny, built once in the wrapper) -----
    w_tm_t = jnp.transpose(params["w_tm"])                        # (2C, 2C)
    b_tm = params["b_tm"].reshape(1, C2)
    w_cls_t = jnp.pad(jnp.transpose(params["w_cls"]),
                      ((0, 0), (0, NCp - NC)))                    # (2C, NCp)
    b_cls = jnp.pad(params["b_cls"], (0, NCp - NC)).reshape(1, NCp)

    const2 = lambda b: (0, 0)

    # Explicit scoped-VMEM limit: enough for the chosen blocks, capped well
    # under the physical VMEM of the current generation.
    weights_bytes = (C2 * C2 + C2 + C2 * NCp + NCp) * 4
    step_bytes = block_b * (2 * T * C + NCp) * 4
    vmem_limit = int(min(vmem_cap * 3 // 4,
                         max(32 << 20, 4 * step_bytes + 2 * weights_bytes)))

    out = pl.pallas_call(
        head_kernel,
        out_shape=jax.ShapeDtypeStruct((Bp, NCp), jnp.float32),
        grid_spec=pltpu.PrefetchScalarGridSpec(
            num_scalar_prefetch=0,
            grid=(Bp // block_b,),
            in_specs=[
                pl.BlockSpec((block_b, T, C), lambda b: (b, 0, 0)),   # rhand
                pl.BlockSpec((block_b, T, C), lambda b: (b, 0, 0)),   # lhand
                pl.BlockSpec((C2, C2), const2),                       # W_tm^T (merged)
                pl.BlockSpec((1, C2), const2),                        # b_tm
                pl.BlockSpec((C2, NCp), const2),                      # W_cls^T (lane-padded)
                pl.BlockSpec((1, NCp), const2),                       # b_cls (lane-padded)
            ],
            out_specs=pl.BlockSpec((block_b, NCp), lambda b: (b, 0)),
        ),
        compiler_params=pltpu.CompilerParams(
            dimension_semantics=("parallel",),
            vmem_limit_bytes=vmem_limit),
    )(rhand, lhand, w_tm_t, b_tm, w_cls_t, b_cls)

    return out[:B, :NC]


def head_reference(rhand, lhand, params):
    """Pure-JAX reference mirroring the PyTorch forward."""
    x = jnp.concatenate([rhand, lhand], axis=2)                       # (B, T, 2C)
    y = jnp.einsum("btc,dc->btd", x, params["w_tm"]) + params["b_tm"]
    s = jax.nn.softmax(y, axis=1)                                     # softmax over T
    z = s * x
    pooled = jnp.max(z, axis=1)                                       # (B, 2C)
    return jnp.einsum("bc,nc->bn", pooled, params["w_cls"]) + params["b_cls"]


def init_params(key, in_channels, num_classes):
    """Deterministic PyTorch-Linear-style init (uniform +-1/sqrt(fan_in))."""
    c2 = in_channels * 2
    k1, k2, k3, k4 = jax.random.split(key, 4)
    lim = 1.0 / jnp.sqrt(jnp.float32(c2))
    return {
        "w_tm": jax.random.uniform(k1, (c2, c2), jnp.float32, -lim, lim),
        "b_tm": jax.random.uniform(k2, (c2,), jnp.float32, -lim, lim),
        "w_cls": jax.random.uniform(k3, (num_classes, c2), jnp.float32, -lim, lim),
        "b_cls": jax.random.uniform(k4, (num_classes,), jnp.float32, -lim, lim),
    }


if __name__ == "__main__":
    B, T, C, NUM_CLASSES = 2, 8, 16, 16   # in_channels=16 -> concat width 2C=32

    key = jax.random.PRNGKey(0)
    k_r, k_l, k_p = jax.random.split(key, 3)
    rhand = jax.random.normal(k_r, (B, T, C), jnp.float32)
    lhand = jax.random.normal(k_l, (B, T, C), jnp.float32)
    params = init_params(k_p, C, NUM_CLASSES)

    out = jax.block_until_ready(head_forward(rhand, lhand, params))
    ref = jax.block_until_ready(head_reference(rhand, lhand, params))

    assert out.shape == (B, NUM_CLASSES)
    # approx=True reciprocal (EUP vrcp) is not bit-exact -> slightly looser tol.
    assert jnp.allclose(out, ref, atol=1e-3, rtol=1e-3), "mismatch vs reference"

    print("KERNEL_OK")
</pallas_src>

<mosaic_0001>
module attributes {stable_mosaic.version = 11 : i64} {
  func.func @head_kernel(%arg0: i32, %arg1: memref<8x8x16xf32, #tpu.memory_space<vmem>>, %arg2: memref<8x8x16xf32, #tpu.memory_space<vmem>>, %arg3: memref<32x32xf32, #tpu.memory_space<vmem>>, %arg4: memref<1x32xf32, #tpu.memory_space<vmem>>, %arg5: memref<32x128xf32, #tpu.memory_space<vmem>>, %arg6: memref<1x128xf32, #tpu.memory_space<vmem>>, %arg7: memref<8x128xf32, #tpu.memory_space<vmem>>) attributes {dimension_semantics = [#tpu.dimension_semantics<parallel>], iteration_bounds = array<i64: 1>, scalar_prefetch = 0 : i64, scratch_operands = 0 : i64, tpu.core_type = #tpu.core_type<tc>, window_params = [{transform_indices = @transform_0, window_bounds = array<i64: 8, 8, 16>}, {transform_indices = @transform_1, window_bounds = array<i64: 8, 8, 16>}, {pipeline_mode = #tpu.pipeline_mode<synchronous>, transform_indices = @transform_2, window_bounds = array<i64: 32, 32>}, {pipeline_mode = #tpu.pipeline_mode<synchronous>, transform_indices = @transform_3, window_bounds = array<i64: 1, 32>}, {pipeline_mode = #tpu.pipeline_mode<synchronous>, transform_indices = @transform_4, window_bounds = array<i64: 32, 128>}, {pipeline_mode = #tpu.pipeline_mode<synchronous>, transform_indices = @transform_5, window_bounds = array<i64: 1, 128>}, {transform_indices = @transform_6, window_bounds = array<i64: 8, 128>}]} {
    %c0 = arith.constant 0 : index
    %c0_0 = arith.constant 0 : index
    %c0_1 = arith.constant 0 : index
    %0 = vector.load %arg1[%c0, %c0_0, %c0_1] : memref<8x8x16xf32, #tpu.memory_space<vmem>>, vector<8x8x16xf32>
    %c0_2 = arith.constant 0 : index
    %c0_3 = arith.constant 0 : index
    %c0_4 = arith.constant 0 : index
    %1 = vector.load %arg2[%c0_2, %c0_3, %c0_4] : memref<8x8x16xf32, #tpu.memory_space<vmem>>, vector<8x8x16xf32>
    %2 = tpu.concatenate %0, %1 in 2 : vector<8x8x16xf32>, vector<8x8x16xf32> -> vector<8x8x32xf32>
    %3 = vector.shape_cast %2 : vector<8x8x32xf32> to vector<64x32xf32>
    %c0_5 = arith.constant 0 : index
    %c0_6 = arith.constant 0 : index
    %4 = vector.load %arg3[%c0_5, %c0_6] : memref<32x32xf32, #tpu.memory_space<vmem>>, vector<32x32xf32>
    %cst = arith.constant dense<0.000000e+00> : vector<64x32xf32>
    %5 = tpu.matmul %3, %4, %cst {dimension_numbers = #tpu.dot_dimension_numbers<[1], [0], [0], [1], [0, 0, 1, 1], [], []>} : vector<64x32xf32>, vector<32x32xf32>, vector<64x32xf32> -> vector<64x32xf32>
    %c0_7 = arith.constant 0 : index
    %c0_8 = arith.constant 0 : index
    %6 = vector.load %arg4[%c0_7, %c0_8] : memref<1x32xf32, #tpu.memory_space<vmem>>, vector<1x32xf32>
    %7 = vector.broadcast %6 : vector<1x32xf32> to vector<64x32xf32>
    %8 = arith.addf %5, %7 : vector<64x32xf32>
    %9 = vector.shape_cast %8 : vector<64x32xf32> to vector<8x8x32xf32>
    %cst_9 = arith.constant dense<0xFF800000> : vector<8x32xf32>
    %10 = vector.multi_reduction <maximumf>, %9, %cst_9 [1] : vector<8x8x32xf32> to vector<8x32xf32>
    %11 = vector.shape_cast %10 : vector<8x32xf32> to vector<8x1x32xf32>
    %12 = vector.broadcast %11 : vector<8x1x32xf32> to vector<8x8x32xf32>
    %13 = arith.subf %9, %12 : vector<8x8x32xf32>
    %14 = math.exp %13 : vector<8x8x32xf32>
    %cst_10 = arith.constant dense<0.000000e+00> : vector<8x32xf32>
    %15 = vector.multi_reduction <add>, %14, %cst_10 [1] : vector<8x8x32xf32> to vector<8x32xf32>
    %16 = vector.shape_cast %15 : vector<8x32xf32> to vector<8x1x32xf32>
    %17 = tpu.reciprocal %16 {approx = true} : vector<8x1x32xf32> -> vector<8x1x32xf32>
    %18 = vector.broadcast %17 : vector<8x1x32xf32> to vector<8x8x32xf32>
    %19 = arith.mulf %14, %18 : vector<8x8x32xf32>
    %20 = arith.mulf %19, %2 : vector<8x8x32xf32>
    %cst_11 = arith.constant dense<0xFF800000> : vector<8x32xf32>
    %21 = vector.multi_reduction <maximumf>, %20, %cst_11 [1] : vector<8x8x32xf32> to vector<8x32xf32>
    %c0_12 = arith.constant 0 : index
    %c0_13 = arith.constant 0 : index
    %22 = vector.load %arg5[%c0_12, %c0_13] : memref<32x128xf32, #tpu.memory_space<vmem>>, vector<32x128xf32>
    %cst_14 = arith.constant dense<0.000000e+00> : vector<8x128xf32>
    %23 = tpu.matmul %21, %22, %cst_14 {dimension_numbers = #tpu.dot_dimension_numbers<[1], [0], [0], [1], [0, 0, 1, 1], [], []>} : vector<8x32xf32>, vector<32x128xf32>, vector<8x128xf32> -> vector<8x128xf32>
    %c0_15 = arith.constant 0 : index
    %c0_16 = arith.constant 0 : index
    %24 = vector.load %arg6[%c0_15, %c0_16] : memref<1x128xf32, #tpu.memory_space<vmem>>, vector<1x128xf32>
    %25 = vector.broadcast %24 : vector<1x128xf32> to vector<8x128xf32>
    %26 = arith.addf %23, %25 : vector<8x128xf32>
    %c0_17 = arith.constant 0 : index
    %c0_18 = arith.constant 0 : index
    %27 = vector.load %arg7[%c0_17, %c0_18] : memref<8x128xf32, #tpu.memory_space<vmem>>, vector<8x128xf32>
    tpu.vector_store %arg7[%c0_17, %c0_18], %26 {strides = array<i32>} : memref<8x128xf32, #tpu.memory_space<vmem>>, vector<8x128xf32>,
    return
  }
  func.func @transform_0(%arg0: i32) -> (i32, i32, i32) {
    %c0_i32 = arith.constant 0 : i32
    %c0_i32_0 = arith.constant 0 : i32
    %c0_i32_1 = arith.constant 0 : i32
    return %arg0, %c0_i32, %c0_i32_0 : i32, i32, i32
  }
  func.func @transform_1(%arg0: i32) -> (i32, i32, i32) {
    %c0_i32 = arith.constant 0 : i32
    %c0_i32_0 = arith.constant 0 : i32
    %c0_i32_1 = arith.constant 0 : i32
    return %arg0, %c0_i32, %c0_i32_0 : i32, i32, i32
  }
  func.func @transform_2(%arg0: i32) -> (i32, i32) {
    %c0_i32 = arith.constant 0 : i32
    %c0_i32_0 = arith.constant 0 : i32
    %c0_i32_1 = arith.constant 0 : i32
    return %c0_i32, %c0_i32_0 : i32, i32
  }
  func.func @transform_3(%arg0: i32) -> (i32, i32) {
    %c0_i32 = arith.constant 0 : i32
    %c0_i32_0 = arith.constant 0 : i32
    %c0_i32_1 = arith.constant 0 : i32
    return %c0_i32, %c0_i32_0 : i32, i32
  }
  func.func @transform_4(%arg0: i32) -> (i32, i32) {
    %c0_i32 = arith.constant 0 : i32
    %c0_i32_0 = arith.constant 0 : i32
    %c0_i32_1 = arith.constant 0 : i32
    return %c0_i32, %c0_i32_0 : i32, i32
  }
  func.func @transform_5(%arg0: i32) -> (i32, i32) {
    %c0_i32 = arith.constant 0 : i32
    %c0_i32_0 = arith.constant 0 : i32
    %c0_i32_1 = arith.constant 0 : i32
    return %c0_i32, %c0_i32_0 : i32, i32
  }
  func.func @transform_6(%arg0: i32) -> (i32, i32) {
    %c0_i32 = arith.constant 0 : i32
    %c0_i32_0 = arith.constant 0 : i32
    return %arg0, %c0_i32 : i32, i32
  }
}

</mosaic_0001>

<bundles_post_ra>
// kernel: tpu_custom_call.1
= control target key start
LH: loop header
LB: loop body
LE: loop exit
PB: predicated region body
PF: predicated region fallthrough
CT: control target
= control target key end

     0   :  { %11 = vsyncpa [#allocation3], 0  ;;  %s1094_s0 = inlined_call_operand.hbm [shape: f32[8,8,16], index: 0, kind: input, shape index: {}]   ;;  %s1095_s1 = inlined_call_operand.hbm [shape: f32[8,8,16], index: 1, kind: input, shape index: {}]   ;;  %s1096_s2 = inlined_call_operand.hbm [shape: f32[32,32], index: 2, kind: input, shape index: {}]   ;;  %s1097_s3 = inlined_call_operand.vmem [shape: f32[1,32], index: 3, kind: input, shape index: {}]   ;;  %s1098_s4 = inlined_call_operand.hbm [shape: f32[32,128], index: 4, kind: input, shape index: {}]   ;;  %s1099_s5 = inlined_call_operand.vmem [shape: f32[1,128], index: 5, kind: input, shape index: {}]   ;;  %s1100_s6 = inlined_call_operand.hbm [shape: f32[8,128], index: 6, kind: output, shape index: {}]  }
   0x1   :  { %12 = vsyncpa [#allocation6], 0 }
   0x2   :  { %13 = vsyncpa [#allocation9], 0 }
   0x3   :  { %14 = vsyncpa [#allocation4], 0  ;;  %s850_s21 = smov [#allocation5]   ;;  %s851_s23 = smov [#allocation2]  }
   0x4   :  { %s32_s22 = sshll.u32 %s850_s21, 4  ;;  %s20_s24 = sshll.u32 %s851_s23, 4  ;;  %s33_s22 = int_to_ptr.vmem [resolvable:$true] %s32_s22  ;;  %s896_s24 = int_to_ptr.vmem [resolvable:$true] %s20_s24 }
   0x5   :  { %s732_s27 = scalar_lea.hbm %s1095_s1, 1024 }
   0x6   :  { %p733_p0 = scmp.ne.s32.totalorder %s1095_s1, %s732_s27  ;;  %p736_p1 = scmp.lt.u32.totalorder %s732_s27, %s1095_s1 }
   0x8   :  { %p738_p2 = pnand %p736_p1, %p733_p0 }
   0xa   :  { %741 = shalt.err (!%p738_p2)
}
   0xb   :  { %s742_s8 = scalar_lea.vmem %s33_s22, 1024  ;;  %p747_p4 = scmp.lt.s32.totalorder %s33_s22, %s33_s22 }
   0xc   :  { %p743_p3 = scmp.ne.s32.totalorder %s33_s22, %s742_s8  ;;  %p748_p5 = scmp.lt.s32.totalorder %s742_s8, %s742_s8 }
   0xe   :  { %p749_p6 = por %p748_p5, %p747_p4 }
  0x10   :  { %p750_p7 = pnand %p749_p6, %p743_p3 }
  0x12   :  { %753 = shalt.err (!%p750_p7)
}
  0x13   :  { %s852_s9 = smov 128   ;;  %s853_s10 = smov 8  }
  0x14   :  { %38 = dma.hbm_to_vmem [thread:$0]  %s1095_s1, 1024, %s33_s22, [#allocation6], %s852_s9, %s852_s9, %s853_s10  }
  0x15   :  { %s754_s15 = scalar_lea.hbm %s1094_s0, 1024 }
  0x16   :  { %p755_p8 = scmp.ne.s32.totalorder %s1094_s0, %s754_s15  ;;  %p758_p9 = scmp.lt.u32.totalorder %s754_s15, %s1094_s0 }
  0x18   :  { %p760_p10 = pnand %p758_p9, %p755_p8 }
  0x1a   :  { %763 = shalt.err (!%p760_p10)
}
  0x1b   :  { %s764_s20 = scalar_lea.vmem %s896_s24, 1024  ;;  %p769_p12 = scmp.lt.s32.totalorder %s896_s24, %s896_s24 }
  0x1c   :  { %p765_p11 = scmp.ne.s32.totalorder %s896_s24, %s764_s20  ;;  %p770_p13 = scmp.lt.s32.totalorder %s764_s20, %s764_s20 }
  0x1e   :  { %p771_p0 = por %p770_p13, %p769_p12 }
  0x20   :  { %p772_p1 = pnand %p771_p0, %p765_p11 }
  0x22   :  { %775 = shalt.err (!%p772_p1)
}
  0x23   :  { %26 = dma.hbm_to_vmem [thread:$0]  %s1094_s0, 1024, %s896_s24, [#allocation3], %s852_s9, %s852_s9, %s853_s10  }
  0x24   :  { %s854_s22 = smov [#allocation7]   ;;  %s855_s25 = smov [#allocation8]  }
  0x25   :  { %s44_s23 = sshll.u32 %s854_s22, 4  ;;  %s58_s26 = sshll.u32 %s855_s25, 4  ;;  %s45_s23 = int_to_ptr.vmem [resolvable:$true] %s44_s23  ;;  %s933_s26 = int_to_ptr.vmem [resolvable:$true] %s58_s26 }
  0x26   :  { %s776_s29 = scalar_lea.hbm %s1096_s2, 512 }
  0x27   :  { %p777_p2 = scmp.ne.s32.totalorder %s1096_s2, %s776_s29  ;;  %p780_p3 = scmp.lt.u32.totalorder %s776_s29, %s1096_s2 }
  0x29   :  { %p782_p4 = pnand %p780_p3, %p777_p2 }
  0x2b   :  { %785 = shalt.err (!%p782_p4)
}
  0x2c   :  { %s786_s0 = scalar_lea.vmem %s45_s23, 512  ;;  %p791_p6 = scmp.lt.s32.totalorder %s45_s23, %s45_s23 }
  0x2d   :  { %p787_p5 = scmp.ne.s32.totalorder %s45_s23, %s786_s0  ;;  %p792_p7 = scmp.lt.s32.totalorder %s786_s0, %s786_s0 }
  0x2f   :  { %p793_p8 = por %p792_p7, %p791_p6 }
  0x31   :  { %p794_p9 = pnand %p793_p8, %p787_p5 }
  0x33   :  { %797 = shalt.err (!%p794_p9)
}
  0x34   :  { %50 = dma.hbm_to_vmem [thread:$0]  %s1096_s2, 512, %s45_s23, [#allocation6], %s852_s9, %s852_s9, %s853_s10  }
  0x35   :  { %s798_s15 = scalar_lea.hbm %s1098_s4, 512 }
  0x36   :  { %p799_p10 = scmp.ne.s32.totalorder %s1098_s4, %s798_s15  ;;  %p802_p11 = scmp.lt.u32.totalorder %s798_s15, %s1098_s4 }
  0x38   :  { %p804_p12 = pnand %p802_p11, %p799_p10 }
  0x3a   :  { %807 = shalt.err (!%p804_p12)
}
  0x3b   :  { %s808_s20 = scalar_lea.vmem %s933_s26, 512  ;;  %p813_p0 = scmp.lt.s32.totalorder %s933_s26, %s933_s26 }
  0x3c   :  { %p809_p13 = scmp.ne.s32.totalorder %s933_s26, %s808_s20  ;;  %p814_p1 = scmp.lt.s32.totalorder %s808_s20, %s808_s20 }
  0x3e   :  { %p815_p2 = por %p814_p1, %p813_p0 }
  0x40   :  { %p816_p3 = pnand %p815_p2, %p809_p13 }
  0x42   :  { %819 = shalt.err (!%p816_p3)
}
  0x43   :  { %64 = dma.hbm_to_vmem [thread:$0]  %s1098_s4, 512, %s933_s26, [#allocation9], %s852_s9, %s852_s9, %s853_s10  }
  0x44   :  { %842 = dma.done.wait [#allocation3], 1024  }
  0x45   :  { %843 = vsyncadd [#allocation3], 4294966272 }
  0x46   :  { %844 = dma.done.wait [#allocation6], 1536  }
  0x47   :  { %845 = vsyncadd [#allocation6], 4294965760 }
  0x48   :  { %846 = dma.done.wait [#allocation9], 512  }
  0x49   :  { %847 = vsyncadd [#allocation9], 4294966784  ;;  %v87_v0 = vld [vmem:[#allocation5] sm:$0xff]  ;;  %v89_v1 = vld [vmem:[#allocation5 + $0x10] sm:$0xff]  ;;  %s856_s21 = smov 16   ;;  %vm127_vm0 = vcmask 130048  }
  0x4a   :  { %103 = vrot.lane.b32.xlu0 %v87_v0, %s856_s21  ;;  %107 = vrot.lane.b32.xlu1 %v89_v1, %s856_s21  ;;  %v88_v2 = vld [vmem:[#allocation5 + $0x8] sm:$0xff]  ;;  %v90_v3 = vld [vmem:[#allocation5 + $0x18] sm:$0xff]  ;;  %v136_v4 = vld [vmem:[#allocation7] sm:$0xff]  ;;  %vm147_vm1 = vcmask 261120   ;;  %v857_v41 = vmov 0.0|0.0   ;;  %vm858_vm2 = vmmov 0  }
  0x4b   :  { %v137_v5 = vld [vmem:[#allocation7 + $0x8] sm:$0xff]  ;;  %v138_v6 = vld [vmem:[#allocation7 + $0x10] sm:$0xff]  ;;  %v139_v7 = vld [vmem:[#allocation7 + $0x18] sm:$0xff]  ;;  %683 = vmatprep.subr.bf16.mxu1 %v857_v41  ;;  %v859_v44 = vmov 0.0   ;;  %vm512_vm3 = vcmask 1041409   ;;  %vm514_vm4 = vcmask 1042434  }
  0x4c   :  { %v675_v8 = vpack.c.bf16 %v137_v5, %v136_v4  ;;  %v679_v9 = vpack.c.bf16 %v139_v7, %v138_v6  ;;  %v91_v10 = vld [vmem:[#allocation5 + $0x20] sm:$0xff]  ;;  %v92_v11 = vld [vmem:[#allocation5 + $0x28] sm:$0xff]  ;;  %v93_v12 = vld [vmem:[#allocation5 + $0x30] sm:$0xff]  ;;  %672 = vmatprep.mubr.msk.f32.mxu1 %vm858_vm2, %v859_v44  ;;  %vm516_vm5 = vcmask 1043459   ;;  %vm518_vm6 = vcmask 1044484   ;;  %s860_s22 = smov [#allocation10]  }
  0x4d   :  { %v94_v13 = vld [vmem:[#allocation5 + $0x38] sm:$0xff]  ;;  %v79_v14 = vld [vmem:[#allocation2] sm:$0xff]  ;;  %v81_v18 = vld [vmem:[#allocation2 + $0x10] sm:$0xff]  ;;  %vm520_vm7 = vcmask 1045509   ;;  %vm522_vm8 = vcmask 1046534   ;;  %vm524_vm9 = vcmask 1047559  }
  0x4e   :  { %105 = vrot.lane.b32.xlu0 %v88_v2, %s856_s21  ;;  %109 = vrot.lane.b32.xlu1 %v90_v3, %s856_s21  ;;  %v80_v19 = vld [vmem:[#allocation2 + $0x8] sm:$0xff]  ;;  %v82_v23 = vld [vmem:[#allocation2 + $0x18] sm:$0xff]  ;;  %v83_v25 = vld [vmem:[#allocation2 + $0x20] sm:$0xff]  ;;  %s605_s23 = sshll.u32 %s860_s22, 4  ;;  %s606_s23 = int_to_ptr.vmem [resolvable:$true] %s605_s23 }
  0x4f   :  { %676 = vmatprep.subr.bf16.mxu0 %v675_v8  ;;  %v84_v29 = vld [vmem:[#allocation2 + $0x28] sm:$0xff]  ;;  %v85_v31 = vld [vmem:[#allocation2 + $0x30] sm:$0xff]  ;;  %v86_v35 = vld [vmem:[#allocation2 + $0x38] sm:$0xff]  ;;  %s820_s25 = scalar_lea.vmem %s606_s23, 128  ;;  %p825_p5 = scmp.lt.s32.totalorder %s606_s23, %s606_s23 }
  0x50   :  { %678 = vmatpush3.bf16.msra.mxu0 %v675_v8  ;;  %v493_v38 = vld [vmem:[#allocation8] sm:$0xff]  ;;  %v494_v39 = vld [vmem:[#allocation8 + $0x8] sm:$0xff]  ;;  %v495_v40 = vld [vmem:[#allocation8 + $0x10] sm:$0xff]  ;;  %p821_p4 = scmp.ne.s32.totalorder %s606_s23, %s820_s25  ;;  %p826_p6 = scmp.lt.s32.totalorder %s820_s25, %s820_s25 }
  0x51   :  { %680 = vmatprep.subr.bf16.mxu0 %v679_v9  ;;  %v684_v42 = vpack.c.bf16 %v494_v39, %v493_v38  ;;  %v496_v43 = vld [vmem:[#allocation8 + $0x18] sm:$0xff]  ;;  %v616_v46 = vld [vmem:[%s1097_s3] ss:$0 sm:$0xff] }
  0x52   :  { %111 = vrot.lane.b32.xlu0 %v91_v10, %s856_s21  ;;  %113 = vrot.lane.b32.xlu1 %v92_v11, %s856_s21  ;;  %v687_v45 = vpack.c.bf16 %v496_v43, %v495_v40  ;;  %p827_p7 = por %p826_p6, %p825_p5 }
  0x53   :  { %685 = vmatpush3.bf16.msra.mxu1 %v684_v42 }
  0x54   :  { %682 = vmatpush3.bf16.msra.mxu0 %v679_v9  ;;  %686 = vmatprep.subr.bf16.mxu1 %v857_v41  ;;  %p828_p8 = pnand %p827_p7, %p821_p4 }
  0x56   :  { %115 = vrot.lane.b32.xlu0 %v93_v12, %s856_s21  ;;  %117 = vrot.lane.b32.xlu1 %v94_v13, %s856_s21 }
  0x57   :  { %688 = vmatpush3.bf16.msra.mxu1 %v687_v45 }
  0xbc   :  { %v104_v15 = vpop.permute.xlu0 %103  ;;  %v108_v16 = vpop.permute.xlu1 %107 }
  0xbd   :  { %v971_v17 = vsel %vm127_vm0, %v79_v14, %v104_v15  ;;  %v976_v20 = vsel %vm127_vm0, %v81_v18, %v108_v16 }
  0xbe   :  { %652 = vmatprep.mubr.msk.f32.mxu0 %vm147_vm1, %v971_v17 }
  0xc0   :  { %v106_v21 = vpop.permute.xlu0 %105  ;;  %v110_v22 = vpop.permute.xlu1 %109 }
  0xc1   :  { %v979_v24 = vsel %vm127_vm0, %v80_v19, %v106_v21  ;;  %v986_v26 = vsel %vm127_vm0, %v82_v23, %v110_v22 }
  0xc2   :  { %653 = vmatmul.mubr.msk.f32.vlgmr.msra.gmra.mrb[0].mxu0 %vm147_vm1, %v979_v24 }
  0xc3   :  { %655 = vmatprep.mubr.msk.f32.mxu0 %vm147_vm1, %v976_v20 }
  0xc4   :  { %v112_v27 = vpop.permute.xlu0 %111  ;;  %v114_v28 = vpop.permute.xlu1 %113 }
  0xc5   :  { %v989_v30 = vsel %vm127_vm0, %v83_v25, %v112_v27  ;;  %v994_v32 = vsel %vm127_vm0, %v84_v29, %v114_v28 }
  0xc6   :  { %656 = vmatmul.mubr.msk.f32.gmra.mrb[2].mxu0 %vm147_vm1, %v986_v26 }
  0xc7   :  { %658 = vmatprep.mubr.msk.f32.mxu0 %vm147_vm1, %v989_v30 }
  0xc8   :  { %v116_v33 = vpop.permute.xlu0 %115  ;;  %v118_v34 = vpop.permute.xlu1 %117 }
  0xc9   :  { %v999_v36 = vsel %vm127_vm0, %v85_v31, %v116_v33  ;;  %v1004_v37 = vsel %vm127_vm0, %v86_v35, %v118_v34 }
  0xca   :  { %659 = vmatmul.mubr.msk.f32.gmra.mrb[4].mxu0 %vm147_vm1, %v994_v32 }
  0xcb   :  { %661 = vmatprep.mubr.msk.f32.mxu0 %vm147_vm1, %v999_v36 }
  0xce   :  { %662 = vmatmul.mubr.msk.f32.gmra.mrb[6].mxu0 %vm147_vm1, %v1004_v37 }
 0x195   :  { %v654_v47 = vpop.f32.mrb[0].mxu0 }
 0x196   :  { %v244_v48 = vadd.f32 %v654_v47, %v616_v46  ;;  %v238_v49 = vpop.f32.mrb[1].mxu0 }
 0x197   :  { %v239_v50 = vadd.f32 %v616_v46, %v238_v49 }
 0x198   :  { %v284_v51 = vsel %vm147_vm1, %v244_v48, -inf }
 0x199   :  { %v285_v52 = vrot.slane %v284_v51, 4  ;;  %v277_v53 = vsel %vm147_vm1, %v239_v50, -inf  ;;  %v657_v54 = vpop.f32.mrb[2].mxu0 }
 0x19a   :  { %v278_v55 = vrot.slane %v277_v53, 4  ;;  %v254_v56 = vadd.f32 %v657_v54, %v616_v46  ;;  %v248_v57 = vpop.f32.mrb[3].mxu0 }
 0x19b   :  { %v286_v58 = vmax.f32 %v284_v51, %v285_v52  ;;  %v249_v59 = vadd.f32 %v616_v46, %v248_v57 }
 0x19c   :  { %v279_v60 = vmax.f32 %v277_v53, %v278_v55  ;;  %v298_v61 = vsel %vm147_vm1, %v254_v56, -inf }
 0x19d   :  { %v287_v62 = vrot.slane %v286_v58, 2  ;;  %v299_v63 = vrot.slane %v298_v61, 4  ;;  %v291_v0 = vsel %vm147_vm1, %v249_v59, -inf  ;;  %v660_v1 = vpop.f32.mrb[4].mxu0 }
 0x19e   :  { %v280_v2 = vrot.slane %v279_v60, 2  ;;  %v292_v3 = vrot.slane %v291_v0, 4  ;;  %v264_v4 = vadd.f32 %v660_v1, %v616_v46  ;;  %v258_v5 = vpop.f32.mrb[5].mxu0 }
 0x19f   :  { %v288_v6 = vmax.f32 %v286_v58, %v287_v62  ;;  %v300_v7 = vmax.f32 %v298_v61, %v299_v63  ;;  %v259_v8 = vadd.f32 %v616_v46, %v258_v5 }
 0x1a0   :  { %v281_v9 = vmax.f32 %v279_v60, %v280_v2  ;;  %v293_v10 = vmax.f32 %v291_v0, %v292_v3  ;;  %v312_v11 = vsel %vm147_vm1, %v264_v4, -inf }
 0x1a1   :  { %v289_v12 = vrot.slane %v288_v6, 1  ;;  %v301_v13 = vrot.slane %v300_v7, 2  ;;  %v313_v14 = vrot.slane %v312_v11, 4  ;;  %v305_v15 = vsel %vm147_vm1, %v259_v8, -inf  ;;  %v663_v16 = vpop.f32.mrb[6].mxu0 }
 0x1a2   :  { %v282_v18 = vrot.slane %v281_v9, 1  ;;  %v294_v19 = vrot.slane %v293_v10, 2  ;;  %v306_v21 = vrot.slane %v305_v15, 4  ;;  %v274_v22 = vadd.f32 %v663_v16, %v616_v46  ;;  %v268_v23 = vpop.f32.mrb[7].mxu0 }
 0x1a3   :  { %v290_v25 = vmax.f32 %v288_v6, %v289_v12  ;;  %v302_v27 = vmax.f32 %v300_v7, %v301_v13  ;;  %v314_v28 = vmax.f32 %v312_v11, %v313_v14  ;;  %v269_v29 = vadd.f32 %v616_v46, %v268_v23 }
 0x1a4   :  { %v283_v31 = vmax.f32 %v281_v9, %v282_v18  ;;  %v295_v33 = vmax.f32 %v293_v10, %v294_v19  ;;  %v307_v34 = vmax.f32 %v305_v15, %v306_v21  ;;  %v326_v35 = vsel %vm147_vm1, %v274_v22, -inf }
 0x1a5   :  { %v334_v38 = vsub.f32 %v244_v48, %v290_v25  ;;  %v303_v39 = vrot.slane %v302_v27, 1  ;;  %v315_v40 = vrot.slane %v314_v28, 2  ;;  %v327_v41 = vrot.slane %v326_v35, 4 }
 0x1a6   :  { %v333_v42 = vsub.f32 %v239_v50, %v283_v31  ;;  %v296_v43 = vrot.slane %v295_v33, 1  ;;  %v308_v44 = vrot.slane %v307_v34, 2  ;;  %v319_v45 = vsel %vm147_vm1, %v269_v29, -inf }
 0x1a7   :  { %v343_v47 = vmul.f32 1.442695, %v334_v38  ;;  %v304_v49 = vmax.f32 %v302_v27, %v303_v39  ;;  %v316_v51 = vmax.f32 %v314_v28, %v315_v40  ;;  %v328_v52 = vmax.f32 %v326_v35, %v327_v41 }
 0x1a8   :  { %v341_v53 = vmul.f32 1.442695, %v333_v42  ;;  %v297_v46 = vmax.f32 %v295_v33, %v296_v43  ;;  %v309_v54 = vmax.f32 %v307_v34, %v308_v44  ;;  %v320_v55 = vrot.slane %v319_v45, 4 }
 0x1a9   :  { %700 = vpow2.f32 %v343_v47  ;;  %v336_v57 = vsub.f32 %v254_v56, %v304_v49  ;;  %v317_v58 = vrot.slane %v316_v51, 1  ;;  %v329_v48 = vrot.slane %v328_v52, 2 }
 0x1aa   :  { %702 = vpow2.f32 %v341_v53  ;;  %v335_v60 = vsub.f32 %v249_v59, %v297_v46  ;;  %v310_v61 = vrot.slane %v309_v54, 1  ;;  %v321_v50 = vmax.f32 %v319_v45, %v320_v55 }
 0x1ab   :  { %v347_v62 = vmul.f32 1.442695, %v336_v57  ;;  %v318_v63 = vmax.f32 %v316_v51, %v317_v58  ;;  %v330_v0 = vmax.f32 %v328_v52, %v329_v48 }
 0x1ac   :  { %v345_v1 = vmul.f32 1.442695, %v335_v60  ;;  %v311_v2 = vmax.f32 %v309_v54, %v310_v61  ;;  %v322_v3 = vrot.slane %v321_v50, 2 }
 0x1ad   :  { %704 = vpow2.f32 %v347_v62  ;;  %v338_v5 = vsub.f32 %v264_v4, %v318_v63  ;;  %v331_v6 = vrot.slane %v330_v0, 1 }
 0x1ae   :  { %706 = vpow2.f32 %v345_v1  ;;  %v337_v7 = vsub.f32 %v259_v8, %v311_v2  ;;  %v323_v9 = vmax.f32 %v321_v50, %v322_v3 }
 0x1af   :  { %v351_v10 = vmul.f32 1.442695, %v338_v5  ;;  %v332_v56 = vmax.f32 %v330_v0, %v331_v6 }
 0x1b0   :  { %v349_v11 = vmul.f32 1.442695, %v337_v7  ;;  %v324_v12 = vrot.slane %v323_v9, 1 }
 0x1b1   :  { %708 = vpow2.f32 %v351_v10  ;;  %v340_v59 = vsub.f32 %v274_v22, %v332_v56 }
 0x1b2   :  { %710 = vpow2.f32 %v349_v11  ;;  %v325_v13 = vmax.f32 %v323_v9, %v324_v12 }
 0x1b3   :  { %v1021_v14 = vpop.eup %700  ;;  %v355_v15 = vmul.f32 1.442695, %v340_v59 }
 0x1b4   :  { %v1023_v16 = vpop.eup %702  ;;  %v364_v4 = vsel %vm147_vm1, %v1021_v14, 0.0  ;;  %v339_v18 = vsub.f32 %v269_v29, %v325_v13 }
 0x1b5   :  { %v365_v19 = vrot.slane %v364_v4, 4  ;;  %v357_v8 = vsel %vm147_vm1, %v1023_v16, 0.0  ;;  %712 = vpow2.f32 %v355_v15 }
 0x1b6   :  { %v358_v21 = vrot.slane %v357_v8, 4  ;;  %v353_v23 = vmul.f32 1.442695, %v339_v18 }
 0x1b7   :  { %v1029_v25 = vpop.eup %704  ;;  %v366_v22 = vadd.f32 %v365_v19, %v364_v4 }
 0x1b8   :  { %v1031_v27 = vpop.eup %706  ;;  %v359_v28 = vadd.f32 %v358_v21, %v357_v8  ;;  %v378_v31 = vsel %vm147_vm1, %v1029_v25, 0.0  ;;  %714 = vpow2.f32 %v353_v23 }
 0x1b9   :  { %v367_v33 = vrot.slane %v366_v22, 2  ;;  %v379_v34 = vrot.slane %v378_v31, 4  ;;  %v371_v29 = vsel %vm147_vm1, %v1031_v27, 0.0 }
 0x1ba   :  { %v360_v35 = vrot.slane %v359_v28, 2  ;;  %v372_v38 = vrot.slane %v371_v29, 4 }
 0x1bb   :  { %v1037_v39 = vpop.eup %708  ;;  %v368_v40 = vadd.f32 %v367_v33, %v366_v22  ;;  %v380_v41 = vadd.f32 %v379_v34, %v378_v31 }
 0x1bc   :  { %v1039_v42 = vpop.eup %710  ;;  %v361_v43 = vadd.f32 %v360_v35, %v359_v28  ;;  %v373_v44 = vadd.f32 %v372_v38, %v371_v29  ;;  %v392_v45 = vsel %vm147_vm1, %v1037_v39, 0.0 }
 0x1bd   :  { %v369_v47 = vrot.slane %v368_v40, 1  ;;  %v381_v49 = vrot.slane %v380_v41, 2  ;;  %v393_v51 = vrot.slane %v392_v45, 4  ;;  %v385_v52 = vsel %vm147_vm1, %v1039_v42, 0.0 }
 0x1be   :  { %v362_v53 = vrot.slane %v361_v43, 1  ;;  %v374_v46 = vrot.slane %v373_v44, 2  ;;  %v386_v54 = vrot.slane %v385_v52, 4 }
 0x1bf   :  { %v1045_v55 = vpop.eup %712  ;;  %v370_v57 = vadd.f32 %v369_v47, %v368_v40  ;;  %v382_v58 = vadd.f32 %v381_v49, %v380_v41  ;;  %v394_v48 = vadd.f32 %v393_v51, %v392_v45 }
 0x1c0   :  { %v363_v60 = vadd.f32 %v362_v53, %v361_v43  ;;  %v375_v61 = vadd.f32 %v374_v46, %v373_v44  ;;  %v387_v50 = vadd.f32 %v386_v54, %v385_v52  ;;  %v406_v62 = vsel %vm147_vm1, %v1045_v55, 0.0 }
 0x1c1   :  { %716 = vrcp.f32 %v370_v57  ;;  %v383_v63 = vrot.slane %v382_v58, 1  ;;  %v395_v0 = vrot.slane %v394_v48, 2  ;;  %v407_v1 = vrot.slane %v406_v62, 4 }
 0x1c2   :  { %v1049_v2 = vpop.eup %714  ;;  %718 = vrcp.f32 %v363_v60  ;;  %v376_v3 = vrot.slane %v375_v61, 1  ;;  %v388_v5 = vrot.slane %v387_v50, 2 }
 0x1c3   :  { %v384_v6 = vadd.f32 %v383_v63, %v382_v58  ;;  %v396_v7 = vadd.f32 %v395_v0, %v394_v48  ;;  %v408_v9 = vadd.f32 %v407_v1, %v406_v62  ;;  %v399_v10 = vsel %vm147_vm1, %v1049_v2, 0.0 }
 0x1c4   :  { %v377_v56 = vadd.f32 %v376_v3, %v375_v61  ;;  %v389_v11 = vadd.f32 %v388_v5, %v387_v50  ;;  %v400_v12 = vrot.slane %v399_v10, 4 }
 0x1c5   :  { %720 = vrcp.f32 %v384_v6  ;;  %v397_v59 = vrot.slane %v396_v7, 1  ;;  %v409_v13 = vrot.slane %v408_v9, 2 }
 0x1c6   :  { %722 = vrcp.f32 %v377_v56  ;;  %v390_v15 = vrot.slane %v389_v11, 1  ;;  %v401_v4 = vadd.f32 %v400_v12, %v399_v10 }
 0x1c7   :  { %v398_v18 = vadd.f32 %v397_v59, %v396_v7  ;;  %v410_v19 = vadd.f32 %v409_v13, %v408_v9 }
 0x1c8   :  { %v391_v8 = vadd.f32 %v390_v15, %v389_v11  ;;  %v402_v21 = vrot.slane %v401_v4, 2 }
 0x1c9   :  { %724 = vrcp.f32 %v398_v18  ;;  %v411_v23 = vrot.slane %v410_v19, 1 }
 0x1ca   :  { %726 = vrcp.f32 %v391_v8  ;;  %v403_v22 = vadd.f32 %v402_v21, %v401_v4 }
 0x1cb   :  { %v717_v28 = vpop.eup %716  ;;  %v412_v31 = vadd.f32 %v411_v23, %v410_v19 }
 0x1cc   :  { %v719_v33 = vpop.eup %718  ;;  %v422_v34 = vmul.f32 %v717_v28, %v1021_v14  ;;  %v404_v29 = vrot.slane %v403_v22, 1 }
 0x1cd   :  { %v421_v35 = vmul.f32 %v719_v33, %v1023_v16  ;;  %728 = vrcp.f32 %v412_v31 }
 0x1ce   :  { %v430_v38 = vmul.f32 %v422_v34, %v979_v24  ;;  %v405_v40 = vadd.f32 %v404_v29, %v403_v22 }
 0x1cf   :  { %v721_v41 = vpop.eup %720  ;;  %v429_v43 = vmul.f32 %v421_v35, %v971_v17 }
 0x1d0   :  { %v723_v44 = vpop.eup %722  ;;  %v444_v45 = vsel %vm147_vm1, %v430_v38, -inf  ;;  %v424_v47 = vmul.f32 %v721_v41, %v1029_v25  ;;  %730 = vrcp.f32 %v405_v40 }
 0x1d1   :  { %v445_v49 = vrot.slane %v444_v45, 4  ;;  %v437_v51 = vsel %vm147_vm1, %v429_v43, -inf  ;;  %v423_v14 = vmul.f32 %v723_v44, %v1031_v27 }
 0x1d2   :  { %v438_v52 = vrot.slane %v437_v51, 4  ;;  %v432_v16 = vmul.f32 %v424_v47, %v986_v26 }
 0x1d3   :  { %v725_v53 = vpop.eup %724  ;;  %v446_v24 = vmax.f32 %v444_v45, %v445_v49  ;;  %v431_v46 = vmul.f32 %v423_v14, %v976_v20 }
 0x1d4   :  { %v727_v54 = vpop.eup %726  ;;  %v439_v17 = vmax.f32 %v437_v51, %v438_v52  ;;  %v458_v57 = vsel %vm147_vm1, %v432_v16, -inf  ;;  %v426_v58 = vmul.f32 %v725_v53, %v1037_v39 }
 0x1d5   :  { %v447_v25 = vrot.slane %v446_v24, 2  ;;  %v459_v48 = vrot.slane %v458_v57, 4  ;;  %v451_v60 = vsel %vm147_vm1, %v431_v46, -inf  ;;  %v425_v61 = vmul.f32 %v727_v54, %v1039_v42 }
 0x1d6   :  { %v440_v27 = vrot.slane %v439_v17, 2  ;;  %v452_v50 = vrot.slane %v451_v60, 4  ;;  %v434_v26 = vmul.f32 %v426_v58, %v994_v32 }
 0x1d7   :  { %v729_v62 = vpop.eup %728  ;;  %v448_v63 = vmax.f32 %v446_v24, %v447_v25  ;;  %v460_v0 = vmax.f32 %v458_v57, %v459_v48  ;;  %v433_v20 = vmul.f32 %v425_v61, %v989_v30  ;;  %v625_v48 = vld [vmem:[%s1099_s5] ss:$0 sm:$0xff] }
 0x1d8   :  { %v441_v1 = vmax.f32 %v439_v17, %v440_v27  ;;  %v453_v3 = vmax.f32 %v451_v60, %v452_v50  ;;  %v428_v39 = vmul.f32 %v729_v62, %v1045_v55  ;;  %v472_v5 = vsel %vm147_vm1, %v434_v26, -inf }
 0x1d9   :  { %v465_v6 = vsel %vm147_vm1, %v433_v20, -inf  ;;  %v449_v7 = vrot.slane %v448_v63, 1  ;;  %v461_v42 = vrot.slane %v460_v0, 2  ;;  %v473_v9 = vrot.slane %v472_v5, 4 }
 0x1da   :  { %v731_v10 = vpop.eup %730  ;;  %v454_v56 = vrot.slane %v453_v3, 2  ;;  %v466_v32 = vrot.slane %v465_v6, 4  ;;  %v436_v11 = vmul.f32 %v428_v39, %v1004_v37  ;;  %v442_v12 = vrot.slane %v441_v1, 1 }
 0x1db   :  { %v427_v30 = vmul.f32 %v731_v10, %v1049_v2  ;;  %v450_v59 = vmax.f32 %v448_v63, %v449_v7  ;;  %v462_v13 = vmax.f32 %v460_v0, %v461_v42  ;;  %v474_v15 = vmax.f32 %v472_v5, %v473_v9 }
 0x1dc   :  { %v443_v4 = vmax.f32 %v441_v1, %v442_v12  ;;  %v455_v55 = vmax.f32 %v453_v3, %v454_v56  ;;  %v467_v18 = vmax.f32 %v465_v6, %v466_v32  ;;  %v486_v19 = vsel %vm147_vm1, %v436_v11, -inf }
 0x1dd   :  { %v435_v8 = vmul.f32 %v427_v30, %v999_v36  ;;  %v463_v21 = vrot.slane %v462_v13, 1  ;;  %v475_v23 = vrot.slane %v474_v15, 2  ;;  %v487_v22 = vrot.slane %v486_v19, 4 }
 0x1de   :  { %v456_v28 = vrot.slane %v455_v55, 1  ;;  %v468_v31 = vrot.slane %v467_v18, 2  ;;  %v513_v37 = vsel %vm512_vm3, %v450_v59, %v443_v4 }
 0x1df   :  { %v476_v33 = vmax.f32 %v474_v15, %v475_v23  ;;  %v479_v2 = vsel %vm147_vm1, %v435_v8, -inf  ;;  %v488_v34 = vmax.f32 %v486_v19, %v487_v22  ;;  %v464_v40 = vmax.f32 %v462_v13, %v463_v21 }
 0x1e0   :  { %v457_v29 = vmax.f32 %v455_v55, %v456_v28  ;;  %v469_v35 = vmax.f32 %v467_v18, %v468_v31  ;;  %v480_v38 = vrot.slane %v479_v2, 4 }
 0x1e1   :  { %v477_v41 = vrot.slane %v476_v33, 1  ;;  %v489_v43 = vrot.slane %v488_v34, 2 }
 0x1e2   :  { %v470_v36 = vrot.slane %v469_v35, 1  ;;  %v481_v44 = vmax.f32 %v479_v2, %v480_v38  ;;  %v515_v45 = vsel %vm514_vm4, %v457_v29, %v513_v37 }
 0x1e3   :  { %v490_v47 = vmax.f32 %v488_v34, %v489_v43  ;;  %v517_v49 = vsel %vm516_vm5, %v464_v40, %v515_v45  ;;  %v478_v52 = vmax.f32 %v476_v33, %v477_v41 }
 0x1e4   :  { %v471_v51 = vmax.f32 %v469_v35, %v470_v36  ;;  %v482_v14 = vrot.slane %v481_v44, 2 }
 0x1e5   :  { %v491_v24 = vrot.slane %v490_v47, 1 }
 0x1e6   :  { %v483_v16 = vmax.f32 %v481_v44, %v482_v14  ;;  %v519_v53 = vsel %vm518_vm6, %v471_v51, %v517_v49 }
 0x1e7   :  { %v521_v46 = vsel %vm520_vm7, %v478_v52, %v519_v53  ;;  %v492_v57 = vmax.f32 %v490_v47, %v491_v24 }
 0x1e8   :  { %v484_v54 = vrot.slane %v483_v16, 1 }
 0x1ea   :  { %v485_v17 = vmax.f32 %v483_v16, %v484_v54 }
 0x1ec   :  { %v523_v58 = vsel %vm522_vm8, %v485_v17, %v521_v46 }
 0x1ed   :  { %v525_v25 = vsel %vm524_vm9, %v492_v57, %v523_v58 }
 0x1ee   :  { %673 = vmatmul.mubr.msk.f32.vlgmr.msra.gmra.mrb[0].mxu1 %vm147_vm1, %v525_v25 }
 0x2c1   :  { %v594_v60 = vpop.f32.mrb[0].mxu1 }
 0x2c2   :  { %v595_v61 = vadd.f32 %v625_v48, %v594_v60  ;;  %v674_v27 = vpop.f32.mrb[1].mxu1 }
 0x2c4   :  { %598 = vst [vmem:[#allocation10] sm:$0xff] %v595_v61 }
 0x2c5   :  { %831 = shalt.err (!%p828_p8)
}
 0x2c6   :  { %s832_s28 = scalar_lea.hbm %s1100_s6, 128 }
 0x2c7   :  { %p833_p9 = scmp.ne.s32.totalorder %s1100_s6, %s832_s28  ;;  %p836_p10 = scmp.lt.u32.totalorder %s832_s28, %s1100_s6 }
 0x2c9   :  { %p838_p11 = pnand %p836_p10, %p833_p9 }
 0x2cb   :  { %841 = shalt.err (!%p838_p11)
}
 0x2cc   :  { %608 = dma.vmem_to_hbm [thread:$0]  %s606_s23, 128, %s1100_s6, [#allocation4]  }
 0x2cd   :  { %848 = dma.done.wait [#allocation4], 128  }
 0x2ce   :  { %849 = vsyncadd [#allocation4], 4294967168 }
 0x2cf   :  { %612 = vsyncpa [#allocation3], 1 }
 0x2d0   :  { %613 = vsyncpa [#allocation6], 1 }
 0x2d1   :  { %614 = vsyncpa [#allocation9], 1 }
 0x2d2   :  { %615 = vsyncpa [#allocation4], 1 }

</bundles_post_ra>
